<compile_context>
chip_gen: v6e
topology: v6e:2x2x1
jax: 0.10.0
libtpu: 0.0.40
codegen_flags: <defaults>
</compile_context>

<pallas_src>
import functools
import math

import jax
import jax.numpy as jnp
from jax.experimental import pallas as pl
from jax.experimental.pallas import tpu as pltpu


def _linear_kernel(x_ref, w_ref, b_ref, o_ref):
    # x_ref: (tm, K_p), w_ref: (K_p, N_p), b_ref: (1, N_p), o_ref: (tm, N_p)
    acc = jnp.dot(x_ref[...], w_ref[...], preferred_element_type=jnp.float32)
    o_ref[...] = (acc + b_ref[...].astype(jnp.float32)).astype(o_ref.dtype)


def _round_up(x, m):
    return ((x + m - 1) // m) * m


def _choose_pack(M, c_e):
    """Largest row-packing factor p (<= 8) with p*c_e a multiple of 128 and p | M."""
    p0 = 128 // math.gcd(128, c_e)          # smallest p giving a lane-dense output
    if p0 > 8:
        return 1
    for p in (min(2 * p0, 8), p0):          # p=4 (for c_e=64) halves x-side lane waste
        if p >= 1 and M % p == 0 and (p * c_e) % 128 == 0:
            return p
    # TODO(synk): odd M falls back to the unpacked path (64-wide masked stores);
    # a main/tail split would avoid the cliff but costs an extra HBM copy either way.
    return 1


def _select_tile_and_vmem(M_p, K_p, N_p, in_itemsize, out_itemsize, tm):
    """Row tile (in packed rows) + explicit VMEM limit from the double-buffered need."""
    if tm is None:
        TM_MAX = 8192      # amortize ~0.35us per-grid-step overhead (biggest lever on v7x)
        MIN_STEPS = 4      # keep a few grid steps for pipelining / megacore sharding
        tm = min(TM_MAX, max(8, _round_up(pl.cdiv(M_p, MIN_STEPS), 8)))
    tm = min(tm, max(8, _round_up(M_p, 8)))
    # Double-buffered in/out tiles + resident (block-diag) weight + bias, lane/sublane padded.
    x_bytes = tm * _round_up(K_p, 128) * in_itemsize
    o_bytes = tm * _round_up(N_p, 128) * out_itemsize
    w_bytes = _round_up(K_p, 8) * _round_up(N_p, 128) * in_itemsize
    b_bytes = 8 * _round_up(N_p, 128) * 4
    need = 2 * (x_bytes + o_bytes + w_bytes + b_bytes)
    # ~24 MiB at tm=8192/p=4/f32 -> limit ~32 MiB: fits v5e/v6e (128 MiB) and v7x (64 MiB).
    vmem_limit = int(max(32 << 20, need + (4 << 20)))
    return tm, vmem_limit


@functools.partial(
    jax.jit,
    static_argnames=("p", "tm", "vmem_limit", "compute_dtype", "out_dtype"),
)
def _forward(x, w_in, b_in, *, p, tm, vmem_limit, compute_dtype, out_dtype):
    *lead, emsa_dim = x.shape
    N_p = w_in.shape[1]
    c_e = N_p // p
    K_p = p * emsa_dim
    M = 1
    for d in lead:
        M *= d
    M_p = M // p

    x_in = x.astype(compute_dtype).reshape(M_p, K_p)   # contiguous row-major view; free

    grid = (pl.cdiv(M_p, tm),)   # ragged last block: OOB output rows are masked by Pallas

    cost = pl.CostEstimate(
        flops=2 * M_p * K_p * N_p,   # includes the p-fold zero-MAC inflation of block-diag W
        transcendentals=0,
        bytes_accessed=(
            x_in.size * x_in.dtype.itemsize
            + M_p * N_p * jnp.dtype(out_dtype).itemsize
            + w_in.size * w_in.dtype.itemsize
            + b_in.size * b_in.dtype.itemsize
        ),
    )

    out2d = pl.pallas_call(
        _linear_kernel,
        out_shape=jax.ShapeDtypeStruct((M_p, N_p), out_dtype),
        grid_spec=pltpu.PrefetchScalarGridSpec(
            num_scalar_prefetch=0,
            grid=grid,
            in_specs=[
                pl.BlockSpec((tm, K_p), lambda i: (i, 0)),    # x tile (streamed)
                pl.BlockSpec((K_p, N_p), lambda i: (0, 0)),   # block-diag W (resident)
                pl.BlockSpec((1, N_p), lambda i: (0, 0)),     # bias (resident)
            ],
            out_specs=pl.BlockSpec((tm, N_p), lambda i: (i, 0)),
        ),
        compiler_params=pltpu.CompilerParams(
            # TODO(synk): on v7x switch to pltpu.CORE_PARALLEL if a profile shows only
            # one TensorCore streaming; "parallel" is the safe choice on v5e/v6e (1 TC).
            dimension_semantics=("parallel",),
            vmem_limit_bytes=vmem_limit,
        ),
        cost_estimate=cost,
    )(x_in, w_in, b_in)

    # Free row-major reshape undoes the row packing.
    return out2d.reshape(*lead, c_e)


class ExtraMSAEmbedderPallas:
    """ExtraMSAEmbedder forward; packed weight/bias are built once and cached."""

    def __init__(self, weight, bias, *, compute_dtype=None, out_dtype=None):
        self.weight = jnp.asarray(weight)          # [c_e, emsa_dim] (nn.Linear layout)
        self.bias = jnp.asarray(bias)              # [c_e]
        self.c_e, self.emsa_dim = self.weight.shape
        self.compute_dtype = compute_dtype         # e.g. jnp.bfloat16 to halve read traffic
        self.out_dtype = out_dtype                 # e.g. jnp.bfloat16 to halve write traffic
        self._packed = {}                          # (p, dtype) -> (w_in, b_in)

    def _packed_params(self, p, compute_dtype):
        key = (p, jnp.dtype(compute_dtype))
        if key not in self._packed:
            # NOTE: weight is cast to the compute dtype; if that is bf16 this is an
            # intentional precision trade vs the f32 nn.Linear (accumulation stays f32).
            w_t = self.weight.T.astype(compute_dtype)               # [emsa_dim, c_e]
            if p > 1:
                w_in = jnp.kron(jnp.eye(p, dtype=w_t.dtype), w_t)   # [p*K, p*c_e] block-diag
                b_in = jnp.tile(self.bias, p).reshape(1, p * self.c_e)
            else:
                w_in = w_t
                b_in = self.bias.reshape(1, self.c_e)
            self._packed[key] = (jax.device_put(w_in), jax.device_put(b_in))
        return self._packed[key]

    def __call__(self, extra_msa_feat, *, tm=None):
        *lead, emsa_dim = extra_msa_feat.shape
        if emsa_dim != self.emsa_dim:
            raise ValueError(f"expected last dim {self.emsa_dim}, got {emsa_dim}")
        M = 1
        for d in lead:
            M *= d
        compute_dtype = jnp.dtype(self.compute_dtype or extra_msa_feat.dtype)
        out_dtype = jnp.dtype(self.out_dtype or extra_msa_feat.dtype)
        p = _choose_pack(M, self.c_e)
        w_in, b_in = self._packed_params(p, compute_dtype)
        tm_sel, vmem_limit = _select_tile_and_vmem(
            M // p, p * emsa_dim, p * self.c_e,
            compute_dtype.itemsize, out_dtype.itemsize, tm)
        return _forward(extra_msa_feat, w_in, b_in, p=p, tm=tm_sel,
                        vmem_limit=vmem_limit, compute_dtype=compute_dtype,
                        out_dtype=out_dtype)


def extra_msa_embedder_fwd(extra_msa_feat, weight, bias, *, tm=None,
                           compute_dtype=None, out_dtype=None):
    """One-shot functional API (re-packs the tiny weight each call; prefer the class)."""
    emb = ExtraMSAEmbedderPallas(weight, bias, compute_dtype=compute_dtype,
                                 out_dtype=out_dtype)
    return emb(extra_msa_feat, tm=tm)


def _reference(extra_msa_feat, weight, bias):
    return jnp.einsum("...k,ck->...c", extra_msa_feat, weight) + bias


def _check(batch, n_extra_seq, n_res, emsa_dim, c_e, key, out_dtype=None, atol=1e-5):
    kx, kw, kb = jax.random.split(key, 3)
    x = jax.random.normal(kx, (batch, n_extra_seq, n_res, emsa_dim), dtype=jnp.float32)
    w = jax.random.normal(kw, (c_e, emsa_dim), dtype=jnp.float32) * (emsa_dim ** -0.5)
    b = jax.random.normal(kb, (c_e,), dtype=jnp.float32) * 0.01

    emb = ExtraMSAEmbedderPallas(w, b, out_dtype=out_dtype)
    out = jax.block_until_ready(emb(x))
    ref = _reference(x, w, b)
    assert out.shape == (batch, n_extra_seq, n_res, c_e), out.shape
    err = float(jnp.max(jnp.abs(out.astype(jnp.float32) - ref)))
    assert err <= atol, err
    return err


if __name__ == "__main__":
    key = jax.random.PRNGKey(0)
    k1, k2, k3, k4 = jax.random.split(key, 4)

    # AlphaFold extra-MSA dims, M % 4 == 0 -> p=4 lane-dense path.
    _check(batch=2, n_extra_seq=8, n_res=16, emsa_dim=25, c_e=64, key=k1)

    # Ragged last row-block inside the p=4 path (M/4 not a multiple of tm).
    _check(batch=2, n_extra_seq=8, n_res=15, emsa_dim=25, c_e=64, key=k2)

    # Odd total rows -> p=1 fallback (masked 64-wide stores), still correct.
    _check(batch=1, n_extra_seq=3, n_res=7, emsa_dim=25, c_e=64, key=k3)

    # Larger M: multiple grid steps with the auto-selected tile; bf16 output knob.
    _check(batch=1, n_extra_seq=32, n_res=64, emsa_dim=25, c_e=64, key=k4,
           out_dtype=jnp.bfloat16, atol=5e-2)

    print("KERNEL_OK")
</pallas_src>

<mosaic_0001>
module attributes {stable_mosaic.version = 11 : i64} {
  func.func @_linear_kernel(%arg0: i32, %arg1: memref<16x100xf32, #tpu.memory_space<vmem>>, %arg2: memref<100x256xf32, #tpu.memory_space<vmem>>, %arg3: memref<1x256xf32, #tpu.memory_space<vmem>>, %arg4: memref<16x256xf32, #tpu.memory_space<vmem>>) attributes {dimension_semantics = [#tpu.dimension_semantics<parallel>], iteration_bounds = array<i64: 4>, scalar_prefetch = 0 : i64, scratch_operands = 0 : i64, tpu.core_type = #tpu.core_type<tc>, window_params = [{transform_indices = @transform_0, window_bounds = array<i64: 16, 100>}, {pipeline_mode = #tpu.pipeline_mode<synchronous>, transform_indices = @transform_1, window_bounds = array<i64: 100, 256>}, {pipeline_mode = #tpu.pipeline_mode<synchronous>, transform_indices = @transform_2, window_bounds = array<i64: 1, 256>}, {transform_indices = @transform_3, window_bounds = array<i64: 16, 256>}]} {
    %c0 = arith.constant 0 : index
    %c0_0 = arith.constant 0 : index
    %0 = vector.load %arg1[%c0, %c0_0] : memref<16x100xf32, #tpu.memory_space<vmem>>, vector<16x100xf32>
    %c0_1 = arith.constant 0 : index
    %c0_2 = arith.constant 0 : index
    %1 = vector.load %arg2[%c0_1, %c0_2] : memref<100x256xf32, #tpu.memory_space<vmem>>, vector<100x256xf32>
    %cst = arith.constant dense<0.000000e+00> : vector<16x256xf32>
    %2 = tpu.matmul %0, %1, %cst {dimension_numbers = #tpu.dot_dimension_numbers<[1], [0], [0], [1], [0, 0, 1, 1], [], []>} : vector<16x100xf32>, vector<100x256xf32>, vector<16x256xf32> -> vector<16x256xf32>
    %c0_3 = arith.constant 0 : index
    %c0_4 = arith.constant 0 : index
    %3 = vector.load %arg3[%c0_3, %c0_4] : memref<1x256xf32, #tpu.memory_space<vmem>>, vector<1x256xf32>
    %4 = vector.broadcast %3 : vector<1x256xf32> to vector<16x256xf32>
    %5 = arith.addf %2, %4 : vector<16x256xf32>
    %c0_5 = arith.constant 0 : index
    %c0_6 = arith.constant 0 : index
    %6 = vector.load %arg4[%c0_5, %c0_6] : memref<16x256xf32, #tpu.memory_space<vmem>>, vector<16x256xf32>
    tpu.vector_store %arg4[%c0_5, %c0_6], %5 {strides = array<i32>} : memref<16x256xf32, #tpu.memory_space<vmem>>, vector<16x256xf32>,
    return
  }
  func.func @transform_0(%arg0: i32) -> (i32, i32) {
    %c0_i32 = arith.constant 0 : i32
    %c0_i32_0 = arith.constant 0 : i32
    return %arg0, %c0_i32 : i32, i32
  }
  func.func @transform_1(%arg0: i32) -> (i32, i32) {
    %c0_i32 = arith.constant 0 : i32
    %c0_i32_0 = arith.constant 0 : i32
    %c0_i32_1 = arith.constant 0 : i32
    return %c0_i32, %c0_i32_0 : i32, i32
  }
  func.func @transform_2(%arg0: i32) -> (i32, i32) {
    %c0_i32 = arith.constant 0 : i32
    %c0_i32_0 = arith.constant 0 : i32
    %c0_i32_1 = arith.constant 0 : i32
    return %c0_i32, %c0_i32_0 : i32, i32
  }
  func.func @transform_3(%arg0: i32) -> (i32, i32) {
    %c0_i32 = arith.constant 0 : i32
    %c0_i32_0 = arith.constant 0 : i32
    return %arg0, %c0_i32 : i32, i32
  }
}

</mosaic_0001>

<bundles_post_ra>
// kernel: _forward.1
= control target key start
LH: loop header
LB: loop body
LE: loop exit
PB: predicated region body
PF: predicated region fallthrough
CT: control target
= control target key end

     0   :  { %s450_s12 = smov 0   ;;  %s554_s0 = inlined_call_operand.vmem [shape: f32[64,100], index: 0, kind: input, shape index: {}]   ;;  %s555_s1 = inlined_call_operand.vmem [shape: f32[100,256], index: 1, kind: input, shape index: {}]   ;;  %s556_s2 = inlined_call_operand.vmem [shape: f32[1,256], index: 2, kind: input, shape index: {}]   ;;  %s557_s3 = inlined_call_operand.vmem [shape: f32[64,256], index: 3, kind: output, shape index: {}]  }
   0x1 LB: > { %s369_s13 = sadd.s32 4294967295, %s427_s12   ;;  %p373_p0 = scmp.ge.s32.totalorder %s427_s12, 1  ;;  %s427_s12 = sphi %s450_s12, %s13_s12  }
   0x2   : > { %p138_p1 = scmp.lt.s32.totalorder %s427_s12, 5 }
   0x4   : > { %p139_p2 = pnand %p373_p0, %p138_p1 }
   0x5   : > { %s374_s9 = sshll.u32 (!%p139_p2), %s369_s13, 1 }
   0x6   : > { %142 = sbr.rel (%p139_p2) target bundleno = 237 (0xed), region = 32  ;;  %p164_p3 = scmp.lt.s32.totalorder (!%p139_p2), %s374_s9, 7 }
   0xb   : > { %v203_v0 = vld [vmem:[%s555_s1 + $0xc8] sm:$0xf]  ;;  %vm223_vm0 = vcmask 1043456   ;;  %v202_v1 = vld [vmem:[%s555_s1 + $0xc0] sm:$0xf]  ;;  %v201_v2 = vld [vmem:[%s555_s1 + $0xb8] sm:$0xff]  ;;  %v206_v29 = vlaneseq }
   0xc   : > { %379 = vmatprep.subr.msk.mxu0 %vm223_vm0, %v203_v0  ;;  %386 = vmatprep.subr.msk.mxu1 %vm223_vm0, %v203_v0  ;;  %v200_v3 = vld [vmem:[%s555_s1 + $0xb0] sm:$0xff]  ;;  %v199_v4 = vld [vmem:[%s555_s1 + $0xa8] sm:$0xff]  ;;  %v198_v5 = vld [vmem:[%s555_s1 + $0xa0] sm:$0xff]  ;;  %s559_s9 = smov (!%p164_p3, %s374_s9), 7  ;;  %vm216_vm1 = vcmask 818176   ;;  %v429_v28 = vmov 0.0  }
   0xd   : > { %380 = vmatpush1.msk.msra.mxu0 %vm223_vm0, %v202_v1  ;;  %399 = vmatpush1.msk.msra.mxu1 %vm223_vm0, %v202_v1  ;;  %v197_v6 = vld [vmem:[%s555_s1 + $0x98] sm:$0xff]  ;;  %v196_v7 = vld [vmem:[%s555_s1 + $0x90] sm:$0xff]  ;;  %v195_v8 = vld [vmem:[%s555_s1 + $0x88] sm:$0xff]  ;;  %s375_s6 = sshll.u32 %s559_s9, 3  ;;  %v207_v30 = vshrl.u32 %v206_v29, 7  ;;  %s385_s22 = sshll.u32 %s559_s9, 4 }
   0xe   : > { %238 = vmatprep.subr.mxu0 %v201_v2  ;;  %387 = vmatprep.subr.mxu1 %v201_v2  ;;  %v194_v9 = vld [vmem:[%s555_s1 + $0x80] sm:$0xff]  ;;  %v193_v10 = vld [vmem:[%s555_s1 + $0x78] sm:$0xff]  ;;  %v192_v11 = vld [vmem:[%s555_s1 + $0x70] sm:$0xff]  ;;  %s167_s13 = scalar_lea.vmem %s554_s0, %s375_s6  ;;  %s174_s25 = scalar_lea.vmem %s557_s3, %s385_s22 }
   0xf   : > { %239 = vmatpush1.msra.mxu0 %v200_v3  ;;  %400 = vmatpush1.msra.mxu1 %v200_v3  ;;  %v191_v12 = vld [vmem:[%s555_s1 + $0x68] sm:$0xff]  ;;  %v190_v13 = vld [vmem:[%s555_s1 + $0x60] sm:$0xff]  ;;  %v189_v14 = vld [vmem:[%s555_s1 + $0x58] sm:$0xff]  ;;  %v208_v31 = vsub.s32 0, %v207_v30  ;;  %v212_v33 = vsub.s32 1, %v207_v30 }
  0x10   : > { %240 = vmatprep.subr.mxu0 %v199_v4  ;;  %388 = vmatprep.subr.mxu1 %v199_v4  ;;  %v188_v15 = vld [vmem:[%s555_s1 + $0x50] sm:$0xff]  ;;  %v187_v16 = vld [vmem:[%s555_s1 + $0x48] sm:$0xff]  ;;  %v186_v17 = vld [vmem:[%s555_s1 + $0x40] sm:$0xff] }
  0x11   : > { %241 = vmatpush1.msra.mxu0 %v198_v5  ;;  %401 = vmatpush1.msra.mxu1 %v198_v5  ;;  %v185_v18 = vld [vmem:[%s555_s1 + $0x38] sm:$0xff]  ;;  %v184_v19 = vld [vmem:[%s555_s1 + $0x30] sm:$0xff]  ;;  %v183_v20 = vld [vmem:[%s555_s1 + $0x28] sm:$0xff] }
  0x12   : > { %242 = vmatprep.subr.mxu0 %v197_v6  ;;  %389 = vmatprep.subr.mxu1 %v197_v6  ;;  %v182_v21 = vld [vmem:[%s555_s1 + $0x20] sm:$0xff]  ;;  %v181_v22 = vld [vmem:[%s555_s1 + $0x18] sm:$0xff]  ;;  %v180_v23 = vld [vmem:[%s555_s1 + $0x10] sm:$0xff] }
  0x13   : > { %243 = vmatpush1.msra.mxu0 %v196_v7  ;;  %402 = vmatpush1.msra.mxu1 %v196_v7  ;;  %v179_v24 = vld [vmem:[%s555_s1 + $0x8] sm:$0xff]  ;;  %v178_v25 = vld [vmem:[%s555_s1] sm:$0xff] }
  0x14   : > { %244 = vmatprep.subr.mxu0 %v195_v8  ;;  %390 = vmatprep.subr.mxu1 %v195_v8  ;;  %v176_v26 = vld [vmem:[%s167_s13] sm:$0xff]  ;;  %v177_v27 = vld [vmem:[%s167_s13 + $0x8] sm:$0xff] }
  0x15   : > { %245 = vmatpush1.msra.mxu0 %v194_v9  ;;  %403 = vmatpush1.msra.mxu1 %v194_v9  ;;  %v204_v32 = vld [vmem:[%s556_s2] sm:$0x3] }
  0x16   : > { %246 = vmatprep.subr.mxu0 %v193_v10  ;;  %391 = vmatprep.subr.mxu1 %v193_v10  ;;  %v209_v34 = vrot.slane %v204_v32, %v208_v31  ;;  %v213_v35 = vrot.slane %v204_v32, %v212_v33 }
  0x17   : > { %247 = vmatpush1.msra.mxu0 %v192_v11  ;;  %404 = vmatpush1.msra.mxu1 %v192_v11 }
  0x18   : > { %248 = vmatprep.subr.mxu0 %v191_v12  ;;  %392 = vmatprep.subr.mxu1 %v191_v12 }
  0x19   : > { %249 = vmatpush1.msra.mxu0 %v190_v13  ;;  %405 = vmatpush1.msra.mxu1 %v190_v13 }
  0x1a   : > { %250 = vmatprep.subr.mxu0 %v189_v14  ;;  %393 = vmatprep.subr.mxu1 %v189_v14 }
  0x1b   : > { %251 = vmatpush1.msra.mxu0 %v188_v15  ;;  %406 = vmatpush1.msra.mxu1 %v188_v15 }
  0x1c   : > { %252 = vmatprep.subr.mxu0 %v187_v16  ;;  %394 = vmatprep.subr.mxu1 %v187_v16 }
  0x1d   : > { %253 = vmatpush1.msra.mxu0 %v186_v17  ;;  %407 = vmatpush1.msra.mxu1 %v186_v17 }
  0x1e   : > { %254 = vmatprep.subr.mxu0 %v185_v18  ;;  %395 = vmatprep.subr.mxu1 %v185_v18 }
  0x1f   : > { %255 = vmatpush1.msra.mxu0 %v184_v19  ;;  %408 = vmatpush1.msra.mxu1 %v184_v19 }
  0x20   : > { %256 = vmatprep.subr.mxu0 %v183_v20  ;;  %396 = vmatprep.subr.mxu1 %v183_v20 }
  0x21   : > { %257 = vmatpush1.msra.mxu0 %v182_v21  ;;  %409 = vmatpush1.msra.mxu1 %v182_v21 }
  0x22   : > { %258 = vmatprep.subr.mxu0 %v181_v22  ;;  %397 = vmatprep.subr.mxu1 %v181_v22 }
  0x23   : > { %259 = vmatpush1.msra.mxu0 %v180_v23  ;;  %410 = vmatpush1.msra.mxu1 %v180_v23 }
  0x24   : > { %260 = vmatprep.subr.mxu0 %v179_v24  ;;  %398 = vmatprep.subr.mxu1 %v179_v24 }
  0x25   : > { %261 = vmatpush1.msra.mxu0 %v178_v25  ;;  %411 = vmatpush1.msra.mxu1 %v178_v25 }
  0x26   : > { %294 = vmatprep.mubr.f32.mxu0 %v429_v28  ;;  %300 = vmatprep.mubr.f32.mxu1 %v429_v28 }
  0x27   : > { %381 = vmatmul.mubr.msk.f32.vlgmr.msra.gmra.mxu0 %vm216_vm1, %v176_v26  ;;  %382 = vmatmul.mubr.msk.f32.vlgmr.msra.gmra.mxu1 %vm216_vm1, %v177_v27 }
  0xe7   : > { %v296_v36 = vpop.f32.mrf.mxu0  ;;  %v302_v37 = vpop.f32.mrf.mxu1 }
  0xe8   : > { %v297_v38 = vadd.f32 %v296_v36, %v209_v34  ;;  %v303_v39 = vadd.f32 %v302_v37, %v209_v34 }
  0xe9   : > { %v298_v40 = vpop.f32.mrf.mxu0  ;;  %v304_v41 = vpop.f32.mrf.mxu1 }
  0xea   : > { %307 = vst [vmem:[%s174_s25] sm:$0xff] %v297_v38  ;;  %v299_v42 = vadd.f32 %v298_v40, %v213_v35  ;;  %v305_v43 = vadd.f32 %v304_v41, %v213_v35  ;;  %309 = vst [vmem:[%s174_s25 + $0x10] sm:$0xff] %v303_v39 }
  0xec   : > { %308 = vst [vmem:[%s174_s25 + $0x8] sm:$0xff] %v299_v42  ;;  %310 = vst [vmem:[%s174_s25 + $0x18] sm:$0xff] %v305_v43 }
  0xed PF: > { %s13_s12 = sadd.s32 1, %s427_s12  }
  0xee   : > { %p10_p4 = scmp.ge.s32.totalorder %s13_s12, 6  }
  0xf0   :  { %12 = sbr.rel (!%p10_p4) target bundleno = 1 (0x1), region = 62 }

</bundles_post_ra>
